<compile_context>
chip_gen: v7x
topology: tpu7x:2x2x1
jax: 0.10.0
libtpu: 0.0.40
codegen_flags: <defaults>
</compile_context>

<pallas_src>
import jax
import jax.numpy as jnp
from jax.experimental import pallas as pl
from jax.experimental.pallas import tpu as pltpu

LANES = 128
ACC_ROWS = 256                         # 256 x 128 f32 = 128 KiB accumulator cap
DEFAULT_TILE_BYTES = 4 * 1024 * 1024   # per-input HBM->VMEM tile (native dtype)


def _cdiv(a: int, b: int) -> int:
    return (a + b - 1) // b


def _pick_acc_rows(tile_rows: int, pack: int) -> int:
    """Largest divisor of tile_rows that is <= ACC_ROWS and a multiple of pack."""
    cap = min(ACC_ROWS, tile_rows)
    start = cap - (cap % pack)
    for d in range(start, pack - 1, -pack):
        if d > 0 and tile_rows % d == 0:
            return d
    return tile_rows


def _make_mse_kernel(tile_rows: int, acc_rows: int, rows_main: int,
                     n_steps: int, steps_per_part: int, mask_needed: bool):
    """Partial squared-error-sum kernel over (tile_rows, 128) native-dtype tiles."""
    n_chunks = tile_rows // acc_rows
    align = acc_rows & -acc_rows   # largest power-of-two divisor of acc_rows

    def kernel(x_ref, y_ref, o_ref, acc_ref):
        part = pl.program_id(0)          # megacore axis
        step = pl.program_id(1)          # reduction axis (per part)
        g = part * steps_per_part + step  # global (possibly phantom) step

        @pl.when(step == 0)
        def _():
            acc_ref[...] = jnp.zeros_like(acc_ref)

        def chunk(c, masked):
            if isinstance(c, int):
                off = c * acc_rows
            else:
                off = pl.multiple_of(c * acc_rows, align)
            x = x_ref[pl.ds(off, acc_rows), :].astype(jnp.float32)
            y = y_ref[pl.ds(off, acc_rows), :].astype(jnp.float32)
            d = x - y
            sq = d * d
            if masked:
                # True select (NOT multiply-by-mask): out-of-range rows may
                # hold unspecified data (possibly NaN/Inf).
                ridx = (g * tile_rows + c * acc_rows
                        + jax.lax.broadcasted_iota(jnp.int32, sq.shape, 0))
                sq = jnp.where(ridx < rows_main, sq, 0.0)
            acc_ref[...] += sq

        def accumulate(masked):
            if n_chunks == 1:
                chunk(0, masked)
            else:
                def body(c, carry):
                    chunk(c, masked)
                    return carry
                jax.lax.fori_loop(0, n_chunks, body, 0)

        if mask_needed:
            last = n_steps - 1

            @pl.when(g < last)
            def _():
                accumulate(False)

            @pl.when(g >= last)
            def _():
                accumulate(True)
        else:
            accumulate(False)

        @pl.when(step == steps_per_part - 1)
        def _():
            o_ref[0, 0] = jnp.sum(acc_ref[...])

    return kernel


def mse_loss(pred: jax.Array, target: jax.Array, *,
             tile_bytes: int = DEFAULT_TILE_BYTES) -> jax.Array:
    """Mean squared error via a Pallas TPU kernel.

    Matches torch.nn.functional.mse_loss(pred, target, reduction='mean');
    accepts arbitrary matching shapes/dtypes, returns a float32 scalar.
    """
    assert pred.shape == target.shape, "pred/target shape mismatch"
    n = pred.size
    assert n > 0, "empty input"

    dtype = jnp.promote_types(pred.dtype, target.dtype)
    itemsize = jnp.dtype(dtype).itemsize
    pack = max(8, 32 // itemsize)          # sublane packing: f32->8, bf16->16, int8->32
    granule = pack * LANES

    x = pred.astype(dtype).reshape(-1)
    y = target.astype(dtype).reshape(-1)

    n_main = (n // granule) * granule
    rows_main = n_main // LANES

    # Tiny tail (< pack*128 elements) in plain XLA: avoids any full pad copy.
    tail_sum = jnp.float32(0.0)
    if n_main < n:
        xt = x[n_main:].astype(jnp.float32)
        yt = y[n_main:].astype(jnp.float32)
        tail_sum = jnp.sum((xt - yt) * (xt - yt))

    if rows_main == 0:
        # TODO(synk): inputs smaller than one packed granule fall back to XLA.
        return (tail_sum / jnp.float32(n)).astype(jnp.float32)

    # Copy-free 2D view of the main region (slice only when lane-ragged).
    xm = x if n_main == n else x[:n_main]
    ym = y if n_main == n else y[:n_main]
    x2d = xm.reshape(rows_main, LANES)
    y2d = ym.reshape(rows_main, LANES)

    # Byte-targeted, dtype-aware tile height.
    tile_rows_target = max(pack, (tile_bytes // (LANES * itemsize)) // pack * pack)
    tile_rows = min(tile_rows_target, rows_main)
    acc_rows = _pick_acc_rows(tile_rows, pack)

    n_steps = _cdiv(rows_main, tile_rows)
    num_parts = 2 if n_steps >= 2 else 1           # both TensorCores on v7x
    steps_per_part = _cdiv(n_steps, num_parts)
    has_phantom = num_parts * steps_per_part > n_steps
    ragged_last = (rows_main % tile_rows) != 0
    mask_needed = has_phantom or ragged_last
    last_block = n_steps - 1

    def in_map(p, i):
        g = p * steps_per_part + i
        return (jnp.minimum(g, last_block), 0)      # clamp phantom step in-bounds

    kernel = _make_mse_kernel(tile_rows, acc_rows, rows_main, n_steps,
                              steps_per_part, mask_needed)

    in_tile_bytes = tile_rows * LANES * itemsize
    vmem_limit = max(32 * 1024 * 1024,
                     4 * in_tile_bytes + acc_rows * LANES * 4 + 8 * 1024 * 1024)

    cost = pl.CostEstimate(
        flops=3 * n_main,
        transcendentals=0,
        bytes_accessed=2 * n_main * itemsize + 4 * num_parts,
    )

    partials = pl.pallas_call(
        kernel,
        out_shape=jax.ShapeDtypeStruct((num_parts, 1), jnp.float32),
        grid_spec=pltpu.PrefetchScalarGridSpec(
            num_scalar_prefetch=0,
            grid=(num_parts, steps_per_part),
            in_specs=[
                pl.BlockSpec((tile_rows, LANES), in_map),   # pred tile
                pl.BlockSpec((tile_rows, LANES), in_map),   # target tile
            ],
            out_specs=pl.BlockSpec((1, 1), lambda p, i: (p, 0),
                                   memory_space=pltpu.MemorySpace.SMEM),
            scratch_shapes=[pltpu.VMEM((acc_rows, LANES), jnp.float32)],
        ),
        compiler_params=pltpu.CompilerParams(
            dimension_semantics=("parallel", "arbitrary"),
            vmem_limit_bytes=vmem_limit,
        ),
        cost_estimate=cost,
    )(x2d, y2d)

    total = jnp.sum(partials) + tail_sum
    return (total / jnp.float32(n)).astype(jnp.float32)


class Loss:
    """Mirror of UQpy's abstract Loss base (nn.Module, ABC)."""

    def __call__(self, *args, **kwargs):
        return self.forward(*args, **kwargs)

    def forward(self, *args, **kwargs):
        raise NotImplementedError


class MSELoss(Loss):
    """Representative concrete subclass: mean-squared-error reduction."""

    def forward(self, prediction, target):
        return mse_loss(prediction, target)


if __name__ == "__main__":
    key = jax.random.PRNGKey(0)
    k1, k2, k3, k4 = jax.random.split(key, 4)

    loss_fn = jax.jit(mse_loss, static_argnames=("tile_bytes",))

    # 1) Small NCHW shapes consistent with a typical UQpy loss call (f32,
    #    lane-aligned, single grid step).
    B, C, H, W = 2, 4, 16, 16
    pred = jax.random.normal(k1, (B, C, H, W), dtype=jnp.float32)
    target = jax.random.normal(k2, (B, C, H, W), dtype=jnp.float32)
    loss = jax.block_until_ready(loss_fn(pred, target))
    ref = jnp.mean((pred - target) ** 2)
    assert jnp.allclose(loss, ref, rtol=1e-5, atol=1e-6), (loss, ref)

    # 2) Lane-ragged size in bf16: exercises dtype-aware packing (16 sublanes),
    #    copy-free prefix + XLA tail path.
    p2 = jax.random.normal(k3, (3, 5, 113, 113), dtype=jnp.float32)
    t2 = jax.random.normal(k4, (3, 5, 113, 113), dtype=jnp.float32)
    p2b, t2b = p2.astype(jnp.bfloat16), t2.astype(jnp.bfloat16)
    loss2 = jax.block_until_ready(loss_fn(p2b, t2b))
    ref2 = jnp.mean((p2b.astype(jnp.float32) - t2b.astype(jnp.float32)) ** 2)
    assert jnp.allclose(loss2, ref2, rtol=1e-5, atol=1e-5), (loss2, ref2)

    # 3) Same data in f32 with a small tile override: exercises the multi-step
    #    grid, 2-part split with a phantom (odd) step, ragged-last-tile masking
    #    and the in-kernel chunk fold loop.
    loss3 = jax.block_until_ready(loss_fn(p2, t2, tile_bytes=256 * 1024))
    ref3 = jnp.mean((p2 - t2) ** 2)
    assert jnp.allclose(loss3, ref3, rtol=1e-5, atol=1e-5), (loss3, ref3)

    print("KERNEL_OK")
</pallas_src>

<mosaic_0001>
module attributes {stable_mosaic.version = 11 : i64} {
  func.func @kernel(%arg0: i32, %arg1: i32, %arg2: memref<16x128xf32, #tpu.memory_space<vmem>>, %arg3: memref<16x128xf32, #tpu.memory_space<vmem>>, %arg4: memref<1x1xf32, #tpu.memory_space<smem>>, %arg5: memref<16x128xf32, #tpu.memory_space<vmem>>) attributes {dimension_semantics = [#tpu.dimension_semantics<parallel>, #tpu.dimension_semantics<arbitrary>], iteration_bounds = array<i64: 1, 1>, scalar_prefetch = 0 : i64, scratch_operands = 1 : i64, tpu.core_type = #tpu.core_type<tc>, window_params = [{transform_indices = @transform_0, window_bounds = array<i64: 16, 128>}, {transform_indices = @transform_1, window_bounds = array<i64: 16, 128>}, {transform_indices = @transform_2, window_bounds = array<i64: 1, 1>}]} {
    %c0_i32 = arith.constant 0 : i32
    %0 = arith.cmpi eq, %arg1, %c0_i32 : i32
    %1 = arith.extui %0 : i1 to i32
    %c0_i32_0 = arith.constant 0 : i32
    %2 = arith.cmpi ne, %1, %c0_i32_0 : i32
    scf.if %2 {
      %cst = arith.constant 0.000000e+00 : f32
      %13 = vector.broadcast %cst : f32 to vector<16x128xf32>
      %c0_10 = arith.constant 0 : index
      %c0_11 = arith.constant 0 : index
      %14 = vector.load %arg5[%c0_10, %c0_11] : memref<16x128xf32, #tpu.memory_space<vmem>>, vector<16x128xf32>
      tpu.vector_store %arg5[%c0_10, %c0_11], %13 {strides = array<i32>} : memref<16x128xf32, #tpu.memory_space<vmem>>, vector<16x128xf32>,
    } else {
    }
    %c0 = arith.constant 0 : index
    %c0_1 = arith.constant 0 : index
    %3 = vector.load %arg2[%c0, %c0_1] : memref<16x128xf32, #tpu.memory_space<vmem>>, vector<16x128xf32>
    %c0_2 = arith.constant 0 : index
    %c0_3 = arith.constant 0 : index
    %4 = vector.load %arg3[%c0_2, %c0_3] : memref<16x128xf32, #tpu.memory_space<vmem>>, vector<16x128xf32>
    %5 = arith.subf %3, %4 : vector<16x128xf32>
    %6 = arith.mulf %5, %5 : vector<16x128xf32>
    %c0_4 = arith.constant 0 : index
    %c0_5 = arith.constant 0 : index
    %7 = vector.load %arg5[%c0_4, %c0_5] : memref<16x128xf32, #tpu.memory_space<vmem>>, vector<16x128xf32>
    %8 = arith.addf %7, %6 : vector<16x128xf32>
    %c0_6 = arith.constant 0 : index
    %c0_7 = arith.constant 0 : index
    %9 = vector.load %arg5[%c0_6, %c0_7] : memref<16x128xf32, #tpu.memory_space<vmem>>, vector<16x128xf32>
    tpu.vector_store %arg5[%c0_6, %c0_7], %8 {strides = array<i32>} : memref<16x128xf32, #tpu.memory_space<vmem>>, vector<16x128xf32>,
    %c0_i32_8 = arith.constant 0 : i32
    %10 = arith.cmpi eq, %arg1, %c0_i32_8 : i32
    %11 = arith.extui %10 : i1 to i32
    %c0_i32_9 = arith.constant 0 : i32
    %12 = arith.cmpi ne, %11, %c0_i32_9 : i32
    scf.if %12 {
      %c0_10 = arith.constant 0 : index
      %c0_11 = arith.constant 0 : index
      %13 = vector.load %arg5[%c0_10, %c0_11] : memref<16x128xf32, #tpu.memory_space<vmem>>, vector<16x128xf32>
      %14 = vector.shape_cast %13 : vector<16x128xf32> to vector<1x16x128xf32>
      %cst = arith.constant dense<0.000000e+00> : vector<1xf32>
      %15 = vector.multi_reduction <add>, %14, %cst [1, 2] : vector<1x16x128xf32> to vector<1xf32>
      %16 = vector.shape_cast %15 : vector<1xf32> to vector<1x1x1xf32>
      %17 = vector.extract %16[0, 0, 0] : f32 from vector<1x1x1xf32>
      %c0_12 = arith.constant 0 : index
      %c0_13 = arith.constant 0 : index
      %18 = memref.load %arg4[%c0_12, %c0_13] : memref<1x1xf32, #tpu.memory_space<smem>>
      memref.store %17, %arg4[%c0_12, %c0_13] : memref<1x1xf32, #tpu.memory_space<smem>>
    } else {
    }
    return
  }
  func.func @transform_0(%arg0: i32, %arg1: i32) -> (i32, i32) {
    %c1_i32 = arith.constant 1 : i32
    %0 = arith.muli %arg0, %c1_i32 : i32
    %1 = arith.addi %0, %arg1 : i32
    %c0_i32 = arith.constant 0 : i32
    %2 = arith.minsi %1, %c0_i32 : i32
    %c0_i32_0 = arith.constant 0 : i32
    %c0_i32_1 = arith.constant 0 : i32
    return %2, %c0_i32_0 : i32, i32
  }
  func.func @transform_1(%arg0: i32, %arg1: i32) -> (i32, i32) {
    %c1_i32 = arith.constant 1 : i32
    %0 = arith.muli %arg0, %c1_i32 : i32
    %1 = arith.addi %0, %arg1 : i32
    %c0_i32 = arith.constant 0 : i32
    %2 = arith.minsi %1, %c0_i32 : i32
    %c0_i32_0 = arith.constant 0 : i32
    %c0_i32_1 = arith.constant 0 : i32
    return %2, %c0_i32_0 : i32, i32
  }
  func.func @transform_2(%arg0: i32, %arg1: i32) -> (i32, i32) {
    %c0_i32 = arith.constant 0 : i32
    %c0_i32_0 = arith.constant 0 : i32
    return %arg0, %c0_i32 : i32, i32
  }
}

</mosaic_0001>

<bundles_post_ra>
// kernel: mse_loss.1
= control target key start
LH: loop header
LB: loop body
LE: loop exit
PB: predicated region body
PF: predicated region fallthrough
CT: control target
= control target key end

     0   :  { %s193_s0 = inlined_call_operand.vmem [shape: f32[16,128], index: 0, kind: input, shape index: {}]   ;;  %s194_s1 = inlined_call_operand.vmem [shape: f32[16,128], index: 1, kind: input, shape index: {}]   ;;  %s195_s2 = inlined_call_operand.hbm [shape: f32[1,1], index: 2, kind: output, shape index: {}]  }
   0x1   :  { %v82_v0 = vld [vmem:[%s193_s0] sm:$0xff]  ;;  %v83_v1 = vld [vmem:[%s193_s0 + $0x8] sm:$0xff] }
   0x2   :  { %v84_v2 = vld [vmem:[%s194_s1] sm:$0xff]  ;;  %v85_v3 = vld [vmem:[%s194_s1 + $0x8] sm:$0xff] }
   0x3   :  { %v86_v4 = vsub.f32 %v82_v0, %v84_v2 }
   0x4   :  { %7 = vsyncpa [#allocation4], 0  ;;  %v87_v5 = vsub.f32 %v83_v1, %v85_v3  ;;  %s141_s1 = scalar_lea.hbm %s195_s2, 16 }
   0x5   :  { %v88_v6 = vmul.f32 %v86_v4, %v86_v4  ;;  %p142_p0 = scmp.ne.s32.totalorder %s195_s2, %s141_s1  ;;  %p145_p1 = scmp.lt.u32.totalorder %s141_s1, %s195_s2 }
   0x6   :  { %v89_v7 = vmul.f32 %v87_v5, %v87_v5 }
   0x7   :  { %p147_p2 = pnand %p145_p1, %p142_p0 }
   0x8   :  { %v101_v8 = vadd.f32 %v89_v7, %v88_v6 }
   0xa   :  { %102 = vadd.xlane.f32.xlu0 %v101_v8 }
  0x97   :  { %v103_v9 = vpop.xlane.xlu0 %102 }
  0x98   :  { %v104_v10 = vrot.slane %v103_v9, 4 }
  0x9a   :  { %v105_v11 = vadd.f32 %v104_v10, %v103_v9 }
  0x9c   :  { %v106_v12 = vrot.slane %v105_v11, 2 }
  0x9e   :  { %v107_v13 = vadd.f32 %v106_v12, %v105_v11 }
  0xa0   :  { %v108_v14 = vrot.slane %v107_v13, 1 }
  0xa2   :  { %v109_v15 = vadd.f32 %v108_v14, %v107_v13 }
  0xa4   :  { %138 = vpush %v109_v15 }
  0xd5   :  { %s139_s0 = spop %138 }
  0xd6   :  { %112 = sst [smem:[#allocation3]] %s139_s0 }
  0xd7   :  { %150 = shalt.err (!%p147_p2)
}
  0xd8   :  { %s153_s23 = smov [#allocation3]  }
  0xd9   :  { %120 = dma.smem_to_hbm %s153_s23, 16, %s195_s2, [#allocation4]  }
  0xda   :  { %151 = dma.done.wait [#allocation4], 16  }
  0xdb   :  { %152 = vsyncadd [#allocation4], 4294967280 }
  0xdc   :  { %124 = sfence }
  0xdd   :  { %125 = vsyncpa [#allocation4], 1 }

</bundles_post_ra>
